<compile_context>
chip_gen: v7x
topology: tpu7x:2x2x1
jax: 0.10.0
libtpu: 0.0.40
codegen_flags: <defaults>
</compile_context>

<pallas_src>
import functools

import jax
import jax.numpy as jnp
from jax.experimental import pallas as pl
from jax.experimental.pallas import tpu as pltpu


def mlp_kernel(x_ref, w1t_ref, b1_ref, w2t_ref, b2_ref, o_ref):
    # x: (TB, 10); w1t: (10, 16); b1: (1, 16); w2t: (16, 12); b2: (1, 12); o: (TB, 12)
    x = x_ref[...]
    # First matmul on MXU with f32 accumulation.
    h = jnp.dot(x, w1t_ref[...], preferred_element_type=jnp.float32)        # (TB, 16) f32
    # Bias + ReLU kept in f32 (also avoids bf16 VPU emulation on v5e for bf16 inputs).
    h = jnp.maximum(h + b1_ref[...], 0.0)
    # Second matmul; cast activations to the weight dtype (no-op for the f32 path).
    y = jnp.dot(h.astype(w2t_ref.dtype), w2t_ref[...],
                preferred_element_type=jnp.float32)                          # (TB, 12) f32
    o_ref[...] = (y + b2_ref[...]).astype(o_ref.dtype)


def _round_up(v, m):
    return ((v + m - 1) // m) * m


def _choose_batch_tile(batch):
    # TB sits on the sublane axis (last dims are the full 10/12 feature dims), so it only
    # needs to be a multiple of 8; we use multiples of 128 for larger tiles to keep DMA
    # slabs big and round.
    if batch <= 128:
        return _round_up(batch, 8)            # one tile covering the whole batch
    # >= 2 tiles so both v7x TensorCores get work; cap at 16K rows: double-buffered
    # (TB,10)+(TB,12) f32 blocks plus the (TB,16) f32 intermediate stay < ~5 MiB,
    # comfortably inside even v5e's 16 MiB scoped VMEM.
    return min(_round_up(-(-batch // 2), 128), 16384)


@functools.partial(jax.jit, static_argnames=("tile_b",))
def mlp_forward(x, w1, b1, w2, b2, *, tile_b=None):
    """x: (B, 10); w1: (16, 10) torch (out,in) layout; b1: (16,); w2: (12, 16); b2: (12,)."""
    B, d_in = x.shape
    d_hidden = w1.shape[0]
    d_out = w2.shape[0]

    TB = tile_b if tile_b is not None else _choose_batch_tile(B)
    n_tiles = pl.cdiv(B, TB)

    dt = x.dtype
    # Tiny weight-layout plumbing (negligible HBM traffic); biases stay f32 for the epilogue.
    w1t = w1.T.astype(dt)                                   # (10, 16)
    w2t = w2.T.astype(dt)                                   # (16, 12)
    b1r = b1.reshape(1, d_hidden).astype(jnp.float32)       # (1, 16)
    b2r = b2.reshape(1, d_out).astype(jnp.float32)          # (1, 12)

    return pl.pallas_call(
        mlp_kernel,
        out_shape=jax.ShapeDtypeStruct((B, d_out), dt),
        grid_spec=pl.GridSpec(
            grid=(n_tiles,),
            in_specs=[
                # Streamed input tile in native layout (ragged last block is masked).
                pl.BlockSpec((TB, d_in), lambda i: (i, 0)),
                # Weights / biases: constant index_map -> fetched once, VMEM-resident.
                pl.BlockSpec((d_in, d_hidden), lambda i: (0, 0)),
                pl.BlockSpec((1, d_hidden), lambda i: (0, 0)),
                pl.BlockSpec((d_hidden, d_out), lambda i: (0, 0)),
                pl.BlockSpec((1, d_out), lambda i: (0, 0)),
            ],
            out_specs=pl.BlockSpec((TB, d_out), lambda i: (i, 0)),
        ),
        compiler_params=pltpu.CompilerParams(
            dimension_semantics=("parallel",)),   # batch tiles shard across v7x's 2 TCs
    )(x, w1t, b1r, w2t, b2r)


def init_params(key):
    """Mirror torch.nn.Linear init: U(-1/sqrt(fan_in), 1/sqrt(fan_in)), (out, in) layout."""
    k1, k2, k3, k4 = jax.random.split(key, 4)
    bound1 = 1.0 / jnp.sqrt(10.0)
    bound2 = 1.0 / jnp.sqrt(16.0)
    w1 = jax.random.uniform(k1, (16, 10), jnp.float32, -bound1, bound1)
    b1 = jax.random.uniform(k2, (16,), jnp.float32, -bound1, bound1)
    w2 = jax.random.uniform(k3, (12, 16), jnp.float32, -bound2, bound2)
    b2 = jax.random.uniform(k4, (12,), jnp.float32, -bound2, bound2)
    return w1, b1, w2, b2


def _reference(x, w1, b1, w2, b2):
    return jnp.maximum(x.astype(jnp.float32) @ w1.T + b1, 0.0) @ w2.T + b2


if __name__ == "__main__":
    key = jax.random.PRNGKey(0)
    kx, kp, kx2 = jax.random.split(key, 3)
    w1, b1, w2, b2 = init_params(kp)

    # Small-batch check (single tile, TB = 8 on the sublane axis), f32.
    batch = 8
    x = jax.random.normal(kx, (batch, 10), jnp.float32)
    out = jax.block_until_ready(mlp_forward(x, w1, b1, w2, b2))
    ref = _reference(x, w1, b1, w2, b2)
    assert out.shape == (batch, 12), out.shape
    assert jnp.allclose(out, ref, atol=1e-4, rtol=1e-4), "f32 small-batch mismatch"

    # Multi-tile + ragged-last-block check (B=1000 with TB=256 -> 4 tiles, last one partial).
    big_batch = 1000
    xb = jax.random.normal(kx2, (big_batch, 10), jnp.float32)
    out_b = jax.block_until_ready(mlp_forward(xb, w1, b1, w2, b2, tile_b=256))
    ref_b = _reference(xb, w1, b1, w2, b2)
    assert out_b.shape == (big_batch, 12)
    assert jnp.allclose(out_b, ref_b, atol=1e-4, rtol=1e-4), "f32 multi-tile mismatch"

    # Natively-bf16 input path (kernel streams bf16, accumulates f32, outputs bf16).
    xb_bf16 = xb.astype(jnp.bfloat16)
    out_bf16 = jax.block_until_ready(mlp_forward(xb_bf16, w1, b1, w2, b2, tile_b=256))
    assert out_bf16.dtype == jnp.bfloat16
    assert jnp.allclose(out_bf16.astype(jnp.float32), ref_b, atol=5e-2, rtol=5e-2), \
        "bf16 path mismatch"

    print("KERNEL_OK")
</pallas_src>

<mosaic_0001>
module attributes {stable_mosaic.version = 11 : i64} {
  func.func @mlp_kernel(%arg0: i32, %arg1: memref<8x10xf32, #tpu.memory_space<vmem>>, %arg2: memref<10x16xf32, #tpu.memory_space<vmem>>, %arg3: memref<1x16xf32, #tpu.memory_space<vmem>>, %arg4: memref<16x12xf32, #tpu.memory_space<vmem>>, %arg5: memref<1x12xf32, #tpu.memory_space<vmem>>, %arg6: memref<8x12xf32, #tpu.memory_space<vmem>>) attributes {dimension_semantics = [#tpu.dimension_semantics<parallel>], iteration_bounds = array<i64: 1>, scalar_prefetch = 0 : i64, scratch_operands = 0 : i64, tpu.core_type = #tpu.core_type<tc>, window_params = [{transform_indices = @transform_0, window_bounds = array<i64: 8, 10>}, {pipeline_mode = #tpu.pipeline_mode<synchronous>, transform_indices = @transform_1, window_bounds = array<i64: 10, 16>}, {pipeline_mode = #tpu.pipeline_mode<synchronous>, transform_indices = @transform_2, window_bounds = array<i64: 1, 16>}, {pipeline_mode = #tpu.pipeline_mode<synchronous>, transform_indices = @transform_3, window_bounds = array<i64: 16, 12>}, {pipeline_mode = #tpu.pipeline_mode<synchronous>, transform_indices = @transform_4, window_bounds = array<i64: 1, 12>}, {transform_indices = @transform_5, window_bounds = array<i64: 8, 12>}]} {
    %c0 = arith.constant 0 : index
    %c0_0 = arith.constant 0 : index
    %0 = vector.load %arg1[%c0, %c0_0] : memref<8x10xf32, #tpu.memory_space<vmem>>, vector<8x10xf32>
    %c0_1 = arith.constant 0 : index
    %c0_2 = arith.constant 0 : index
    %1 = vector.load %arg2[%c0_1, %c0_2] : memref<10x16xf32, #tpu.memory_space<vmem>>, vector<10x16xf32>
    %cst = arith.constant dense<0.000000e+00> : vector<8x16xf32>
    %2 = tpu.matmul %0, %1, %cst {dimension_numbers = #tpu.dot_dimension_numbers<[1], [0], [0], [1], [0, 0, 1, 1], [], []>} : vector<8x10xf32>, vector<10x16xf32>, vector<8x16xf32> -> vector<8x16xf32>
    %c0_3 = arith.constant 0 : index
    %c0_4 = arith.constant 0 : index
    %3 = vector.load %arg3[%c0_3, %c0_4] : memref<1x16xf32, #tpu.memory_space<vmem>>, vector<1x16xf32>
    %4 = vector.broadcast %3 : vector<1x16xf32> to vector<8x16xf32>
    %5 = arith.addf %2, %4 : vector<8x16xf32>
    %cst_5 = arith.constant 0.000000e+00 : f32
    %6 = vector.broadcast %cst_5 : f32 to vector<8x16xf32>
    %7 = arith.maximumf %5, %6 : vector<8x16xf32>
    %c0_6 = arith.constant 0 : index
    %c0_7 = arith.constant 0 : index
    %8 = vector.load %arg4[%c0_6, %c0_7] : memref<16x12xf32, #tpu.memory_space<vmem>>, vector<16x12xf32>
    %cst_8 = arith.constant dense<0.000000e+00> : vector<8x12xf32>
    %9 = tpu.matmul %7, %8, %cst_8 {dimension_numbers = #tpu.dot_dimension_numbers<[1], [0], [0], [1], [0, 0, 1, 1], [], []>} : vector<8x16xf32>, vector<16x12xf32>, vector<8x12xf32> -> vector<8x12xf32>
    %c0_9 = arith.constant 0 : index
    %c0_10 = arith.constant 0 : index
    %10 = vector.load %arg5[%c0_9, %c0_10] : memref<1x12xf32, #tpu.memory_space<vmem>>, vector<1x12xf32>
    %11 = vector.broadcast %10 : vector<1x12xf32> to vector<8x12xf32>
    %12 = arith.addf %9, %11 : vector<8x12xf32>
    %c0_11 = arith.constant 0 : index
    %c0_12 = arith.constant 0 : index
    %13 = vector.load %arg6[%c0_11, %c0_12] : memref<8x12xf32, #tpu.memory_space<vmem>>, vector<8x12xf32>
    tpu.vector_store %arg6[%c0_11, %c0_12], %12 {strides = array<i32>} : memref<8x12xf32, #tpu.memory_space<vmem>>, vector<8x12xf32>,
    return
  }
  func.func @transform_0(%arg0: i32) -> (i32, i32) {
    %c0_i32 = arith.constant 0 : i32
    %c0_i32_0 = arith.constant 0 : i32
    return %arg0, %c0_i32 : i32, i32
  }
  func.func @transform_1(%arg0: i32) -> (i32, i32) {
    %c0_i32 = arith.constant 0 : i32
    %c0_i32_0 = arith.constant 0 : i32
    %c0_i32_1 = arith.constant 0 : i32
    return %c0_i32, %c0_i32_0 : i32, i32
  }
  func.func @transform_2(%arg0: i32) -> (i32, i32) {
    %c0_i32 = arith.constant 0 : i32
    %c0_i32_0 = arith.constant 0 : i32
    %c0_i32_1 = arith.constant 0 : i32
    return %c0_i32, %c0_i32_0 : i32, i32
  }
  func.func @transform_3(%arg0: i32) -> (i32, i32) {
    %c0_i32 = arith.constant 0 : i32
    %c0_i32_0 = arith.constant 0 : i32
    %c0_i32_1 = arith.constant 0 : i32
    return %c0_i32, %c0_i32_0 : i32, i32
  }
  func.func @transform_4(%arg0: i32) -> (i32, i32) {
    %c0_i32 = arith.constant 0 : i32
    %c0_i32_0 = arith.constant 0 : i32
    %c0_i32_1 = arith.constant 0 : i32
    return %c0_i32, %c0_i32_0 : i32, i32
  }
  func.func @transform_5(%arg0: i32) -> (i32, i32) {
    %c0_i32 = arith.constant 0 : i32
    %c0_i32_0 = arith.constant 0 : i32
    return %arg0, %c0_i32 : i32, i32
  }
}

</mosaic_0001>

<bundles_post_ra>
// kernel: mlp_forward.1
= control target key start
LH: loop header
LB: loop body
LE: loop exit
PB: predicated region body
PF: predicated region fallthrough
CT: control target
= control target key end

     0   :  { %vm35_vm0 = vcmask 1041408   ;;  %v270_v2 = vmov 0.0|0.0   ;;  %vm271_vm1 = vmmov 1   ;;  %vm272_vm3 = vmmov 0   ;;  %s338_s0 = inlined_call_operand.vmem [shape: f32[8,10], index: 0, kind: input, shape index: {}]   ;;  %s339_s1 = inlined_call_operand.vmem [shape: f32[10,16], index: 1, kind: input, shape index: {}]   ;;  %s340_s2 = inlined_call_operand.vmem [shape: f32[1,16], index: 2, kind: input, shape index: {}]   ;;  %s341_s3 = inlined_call_operand.vmem [shape: f32[16,12], index: 3, kind: input, shape index: {}]   ;;  %s342_s4 = inlined_call_operand.vmem [shape: f32[1,12], index: 4, kind: input, shape index: {}]   ;;  %s343_s5 = inlined_call_operand.hbm [shape: f32[8,12], index: 5, kind: output, shape index: {}]  }
   0x1   :  { %v22_v0 = vld [vmem:[%s339_s1] sm:$0xff]  ;;  %v23_v1 = vld [vmem:[%s339_s1 + $0x8] sm:$0x3]  ;;  %234 = vmatprep.subr.bf16.mxu0 %v270_v2  ;;  %vm236_vm2 = vmpackc.low %vm35_vm0, %vm271_vm1  ;;  %238 = vmatprep.subr.bf16.mxu1 %v270_v2  ;;  %v273_v4 = vmov 0.0  }
   0x2   :  { %v235_v3 = vpack.c.bf16 %v23_v1, %v22_v0  ;;  %224 = vmatprep.mubr.msk.f32.mxu0 %vm272_vm3, %v273_v4  ;;  %231 = vmatprep.mubr.msk.f32.mxu1 %vm272_vm3, %v273_v4 }
   0x3   :  { %10 = vsyncpa [#allocation3], 0  ;;  %v21_v5 = vld [vmem:[%s338_s0] sm:$0xff]  ;;  %vm31_vm4 = vcmask 80896   ;;  %v111_v7 = vld [vmem:[%s341_s3 + $0x8] sm:$0xff]  ;;  %vm119_vm5 = vcmask 130048  }
   0x4   :  { %237 = vmatpush3.bf16.msk.msra.mxu0 %vm236_vm2, %v235_v3  ;;  %v110_v6 = vld [vmem:[%s341_s3] sm:$0xff]  ;;  %s274_s30 = smov [#allocation2]   ;;  %vm193_vm6 = vcmask 97280  }
   0x5   :  { %v239_v8 = vpack.c.bf16 %v111_v7, %v110_v6  ;;  %v209_v9 = vld [vmem:[%s340_s2] ss:$0 sm:$0xff]  ;;  %s201_s6 = sshll.u32 %s274_s30, 4  ;;  %s202_s6 = int_to_ptr.vmem [resolvable:$true] %s201_s6 }
   0x6   :  { %v212_v14 = vld [vmem:[%s342_s4] ss:$0 sm:$0xff]  ;;  %s246_s3 = scalar_lea.vmem %s202_s6, 128  ;;  %p251_p1 = scmp.lt.s32.totalorder %s202_s6, %s202_s6 }
   0x7   :  { %225 = vmatmul.mubr.msk.f32.vlgmr.msra.gmra.mrb[0].mxu0 %vm31_vm4, %v21_v5  ;;  %240 = vmatpush3.bf16.msra.mxu1 %v239_v8  ;;  %p247_p0 = scmp.ne.s32.totalorder %s202_s6, %s246_s3  ;;  %p252_p2 = scmp.lt.s32.totalorder %s246_s3, %s246_s3 }
   0x9   :  { %p253_p3 = por %p252_p2, %p251_p1 }
   0xb   :  { %p254_p4 = pnand %p253_p3, %p247_p0 }
  0xda   :  { %v105_v10 = vpop.f32.mrb[0].mxu0 }
  0xdb   :  { %v106_v11 = vadd.f32 %v209_v9, %v105_v10  ;;  %v226_v12 = vpop.f32.mrb[1].mxu0 }
  0xdd   :  { %v109_v13 = vmax.f32 %v106_v11, 0.0 }
  0xdf   :  { %232 = vmatmul.mubr.msk.f32.vlgmr.msra.gmra.mrb[0].mxu1 %vm119_vm5, %v109_v13 }
 0x1b2   :  { %v189_v15 = vpop.f32.mrb[0].mxu1 }
 0x1b3   :  { %v190_v16 = vadd.f32 %v212_v14, %v189_v15  ;;  %v233_v17 = vpop.f32.mrb[1].mxu1 }
 0x1b5   :  { %194 = vst.msk [vmem:[#allocation2] sm:$0xff] %vm193_vm6, %v190_v16 }
 0x1b6   :  { %257 = shalt.err (!%p254_p4)
}
 0x1b7   :  { %s258_s8 = scalar_lea.hbm %s343_s5, 128 }
 0x1b8   :  { %p259_p5 = scmp.ne.s32.totalorder %s343_s5, %s258_s8  ;;  %p262_p6 = scmp.lt.u32.totalorder %s258_s8, %s343_s5 }
 0x1ba   :  { %p264_p7 = pnand %p262_p6, %p259_p5 }
 0x1bc   :  { %267 = shalt.err (!%p264_p7)
}
 0x1bd   :  { %204 = dma.vmem_to_hbm [thread:$0]  %s202_s6, 128, %s343_s5, [#allocation3]  }
 0x1be   :  { %268 = dma.done.wait [#allocation3], 128  }
 0x1bf   :  { %269 = vsyncadd [#allocation3], 4294967168 }
 0x1c0   :  { %208 = vsyncpa [#allocation3], 1 }

</bundles_post_ra>
